<compile_context>
chip_gen: v6e
topology: v6e:2x2x1
jax: 0.10.0
libtpu: 0.0.40
codegen_flags: <defaults>
</compile_context>

<pallas_src>
import functools

import jax
import jax.numpy as jnp
from jax.experimental import pallas as pl
from jax.experimental.pallas import tpu as pltpu

_LANE = 128
_SUBLANE = 8
_TARGET_BLOCK_BYTES = 2 * 1024 * 1024  # ~2 MiB per input buffer per block


def _avg_update_kernel(inv_ref, avg_ref, x_ref, out_ref):
    # inv_ref: (1,) f32 in SMEM holding 1/count (precomputed on host).
    out_ref[...] = (avg_ref[...] + x_ref[...]) * inv_ref[0]


def _choose_tiles(rows, cols, itemsize):
    """Pick (tile_r, tile_c) obeying the (8,128)/full-dim rule, ~2 MiB/block."""
    # Lane tile: prefer the full lane extent (lane-dense stores); cap it by the
    # byte budget of one 8-row slab and keep it a multiple of 128 dividing cols.
    if cols % _LANE == 0:
        max_lane = max(
            _LANE,
            (_TARGET_BLOCK_BYTES // (_SUBLANE * itemsize)) // _LANE * _LANE)
        tile_c = min(cols, max_lane)
        while cols % tile_c != 0:
            tile_c -= _LANE
    else:
        tile_c = cols  # full-dim fallback is always legal

    # Row tile: fill up to the byte budget, multiple of 8, dividing rows.
    if rows % _SUBLANE == 0:
        budget_rows = max(
            _SUBLANE,
            (_TARGET_BLOCK_BYTES // (tile_c * itemsize)) // _SUBLANE * _SUBLANE)
        tile_r = min(rows, budget_rows)
        while rows % tile_r != 0:
            tile_r -= _SUBLANE
    else:
        tile_r = rows  # full-dim fallback

    # Keep at least 2 grid steps when possible so v7x can shard the grid across
    # its two TensorCores (neutral on v5e/v6e single-TC chips).
    if (rows // tile_r) * (cols // tile_c) < 2:
        if tile_c % (2 * _LANE) == 0:
            tile_c //= 2
        elif tile_r % (2 * _SUBLANE) == 0:
            tile_r //= 2
    return tile_r, tile_c


@jax.jit
def _avg_update(avglatent: jax.Array, x: jax.Array, inv_count: jax.Array) -> jax.Array:
    """out = (avglatent + x) * inv_count, computed in a Pallas kernel."""
    assert avglatent.shape == x.shape, (avglatent.shape, x.shape)
    x = x.astype(avglatent.dtype)  # never silently downcast the running average
    n, c, h, w = x.shape

    # Flatten to 2D: rows = N*C, cols = H*W (lane-dense last axis).
    rows, cols = n * c, h * w
    avg2d = avglatent.reshape(rows, cols)
    x2d = x.reshape(rows, cols)

    itemsize = avg2d.dtype.itemsize
    tile_r, tile_c = _choose_tiles(rows, cols, itemsize)
    grid = (rows // tile_r, cols // tile_c)

    out2d = pl.pallas_call(
        _avg_update_kernel,
        out_shape=jax.ShapeDtypeStruct((rows, cols), avglatent.dtype),
        grid=grid,
        in_specs=[
            pl.BlockSpec(memory_space=pltpu.SMEM),                 # 1/count scalar
            pl.BlockSpec((tile_r, tile_c), lambda i, j: (i, j)),   # avglatent tile
            pl.BlockSpec((tile_r, tile_c), lambda i, j: (i, j)),   # input tile
        ],
        out_specs=pl.BlockSpec((tile_r, tile_c), lambda i, j: (i, j)),
        input_output_aliases={1: 0},  # old avglatent buffer is dead -> reuse it
        compiler_params=pltpu.CompilerParams(
            dimension_semantics=("parallel", "parallel"),
            vmem_limit_bytes=32 << 20,
        ),
    )(inv_count, avg2d, x2d)

    return out2d.reshape(n, c, h, w)


class AvglatentlayerPallas:
    """Functional port of Avglatentlayer: holds (avglatent, count) state."""

    def __init__(self, shape, dtype=jnp.float32):
        # register_buffer('avglatent', torch.zeros(1, 64*4, 64, 64)) —
        # here initialized to zeros at the given shape.
        self.avglatent = jnp.zeros(shape, dtype=dtype)
        self.threshold = 1000.0
        self.count = 1.0

    def __call__(self, x: jax.Array) -> jax.Array:
        # The original `if self.train():` branch is always taken.
        if self.count > self.threshold:
            self.count = 1.0
            self.avglatent = x.astype(self.avglatent.dtype)  # plain copy
        else:
            self.count += 1.0
            inv = jnp.full((1,), 1.0 / self.count, dtype=jnp.float32)
            self.avglatent = _avg_update(self.avglatent, x, inv)
        return self.avglatent


if __name__ == "__main__":
    # Small shape consistent with the module's (1, 256, 64, 64) buffer layout.
    N, C, H, W = 2, 4, 16, 16
    key = jax.random.PRNGKey(0)
    x = jax.random.normal(key, (N, C, H, W), dtype=jnp.float32)

    layer = AvglatentlayerPallas((N, C, H, W))
    out = jax.block_until_ready(layer(x))

    # Reference check: first call => count becomes 2, out = (0 + x) / 2.
    ref = x / 2.0
    assert jnp.allclose(out, ref, atol=1e-6), "mismatch vs reference"

    # Second call exercises the running average with a nonzero buffer and
    # verifies the jitted kernel is reused with a different count.
    key2 = jax.random.PRNGKey(1)
    x2 = jax.random.normal(key2, (N, C, H, W), dtype=jnp.float32)
    out2 = jax.block_until_ready(layer(x2))
    ref2 = (ref + x2) / 3.0
    assert jnp.allclose(out2, ref2, atol=1e-6), "mismatch vs reference (step 2)"

    print("KERNEL_OK")
</pallas_src>

<mosaic_0001>
module attributes {stable_mosaic.version = 11 : i64} {
  func.func @_avg_update_kernel(%arg0: i32, %arg1: i32, %arg2: memref<1xf32, #tpu.memory_space<smem>>, %arg3: memref<8x128xf32, #tpu.memory_space<vmem>>, %arg4: memref<8x128xf32, #tpu.memory_space<vmem>>, %arg5: memref<8x128xf32, #tpu.memory_space<vmem>>) attributes {dimension_semantics = [#tpu.dimension_semantics<parallel>, #tpu.dimension_semantics<parallel>], iteration_bounds = array<i64: 1, 2>, scalar_prefetch = 0 : i64, scratch_operands = 0 : i64, tpu.core_type = #tpu.core_type<tc>, window_params = [{transform_indices = @transform_0, window_bounds = array<i64: 1>}, {transform_indices = @transform_1, window_bounds = array<i64: 8, 128>}, {transform_indices = @transform_2, window_bounds = array<i64: 8, 128>}, {transform_indices = @transform_3, window_bounds = array<i64: 8, 128>}]} {
    %c0 = arith.constant 0 : index
    %c0_0 = arith.constant 0 : index
    %0 = vector.load %arg3[%c0, %c0_0] : memref<8x128xf32, #tpu.memory_space<vmem>>, vector<8x128xf32>
    %c0_1 = arith.constant 0 : index
    %c0_2 = arith.constant 0 : index
    %1 = vector.load %arg4[%c0_1, %c0_2] : memref<8x128xf32, #tpu.memory_space<vmem>>, vector<8x128xf32>
    %2 = arith.addf %0, %1 : vector<8x128xf32>
    %c0_3 = arith.constant 0 : index
    %3 = memref.load %arg2[%c0_3] : memref<1xf32, #tpu.memory_space<smem>>
    %4 = vector.broadcast %3 : f32 to vector<8x128xf32>
    %5 = arith.mulf %2, %4 : vector<8x128xf32>
    %c0_4 = arith.constant 0 : index
    %c0_5 = arith.constant 0 : index
    %6 = vector.load %arg5[%c0_4, %c0_5] : memref<8x128xf32, #tpu.memory_space<vmem>>, vector<8x128xf32>
    tpu.vector_store %arg5[%c0_4, %c0_5], %5 {strides = array<i32>} : memref<8x128xf32, #tpu.memory_space<vmem>>, vector<8x128xf32>,
    return
  }
  func.func @transform_0(%arg0: i32, %arg1: i32) -> i32 {
    %c0_i32 = arith.constant 0 : i32
    %c0_i32_0 = arith.constant 0 : i32
    return %c0_i32 : i32
  }
  func.func @transform_1(%arg0: i32, %arg1: i32) -> (i32, i32) {
    %c0_i32 = arith.constant 0 : i32
    return %arg0, %arg1 : i32, i32
  }
  func.func @transform_2(%arg0: i32, %arg1: i32) -> (i32, i32) {
    %c0_i32 = arith.constant 0 : i32
    return %arg0, %arg1 : i32, i32
  }
  func.func @transform_3(%arg0: i32, %arg1: i32) -> (i32, i32) {
    %c0_i32 = arith.constant 0 : i32
    return %arg0, %arg1 : i32, i32
  }
}

</mosaic_0001>

<bundles_post_ra>
// kernel: _avg_update.1
= control target key start
LH: loop header
LB: loop body
LE: loop exit
PB: predicated region body
PF: predicated region fallthrough
CT: control target
= control target key end

     0   :  { %s423_s14 = smov 0   ;;  %s425_s15 = smov 0   ;;  %s447_s0 = inlined_call_operand.<no memory space> [shape: f32[1], index: 0, kind: input, shape index: {}]   ;;  %s448_s1 = inlined_call_operand.vmem [shape: f32[8,256], index: 1, kind: input, shape index: {}, may-alias: {1,3}]   ;;  %s449_s2 = inlined_call_operand.vmem [shape: f32[8,256], index: 2, kind: input, shape index: {}]   ;;  %s450_s3 = inlined_call_operand.vmem [shape: f32[8,256], index: 3, kind: output, shape index: {}, may-alias: {1,3}]  }
   0x1   :  { %8 = sst [smem:[#allocation2]] %s447_s0  ;;  %s427_s16 = smov 0  }
   0x2 LB: > { %s23_s17 = sadd.s32 1, %s394_s15  ;;  %p346_p0 = scmp.ge.s32.totalorder %s398_s16, 1  ;;  %s398_s16 = sphi %s427_s16, %s14_s16   ;;  %s394_s15 = sphi %s425_s15, %s452_s15   ;;  %s390_s14 = sphi %s423_s14, %s451_s14  }
   0x3   : > { %p24_p1 = scmp.ge.s32.totalorder %s23_s17, 2  ;;  %p172_p2 = scmp.lt.s32.totalorder %s398_s16, 3 }
   0x5   : > { %s454_s17 = smov (%p24_p1, %s23_s17), 0  ;;  %p173_p3 = pnand %p346_p0, %p172_p2 }
   0x6   : > { %p212_p4 = scmp.lt.s32.totalorder (!%p173_p3), %s390_s14, 1  ;;  %s237_s0 = sld [smem:[#allocation2]] (!%p173_p3) }
   0x7   : > { %176 = sbr.rel (%p173_p3) target bundleno = 22 (0x16), region = 32 }
   0xc   : > { %s456_s14 = smov (!%p212_p4, %s390_s14), 1  ;;  %v238_v2 = vstv %s237_s0 }
   0xd   : > { %s347_s18 = sshll.u32 %s456_s14, 3 }
   0xe   : > { %s217_s21 = scalar_lea.vmem %s448_s1, %s347_s18  ;;  %s225_s24 = scalar_lea.vmem %s449_s2, %s347_s18 }
   0xf   : > { %v234_v0 = vld [vmem:[%s217_s21] sm:$0xff]  ;;  %s233_s27 = scalar_lea.vmem %s450_s3, %s347_s18 }
  0x10   : > { %v235_v1 = vld [vmem:[%s225_s24] sm:$0xff] }
  0x11   : > { %v236_v3 = vadd.f32 %v235_v1, %v234_v0 }
  0x13   : > { %v239_v4 = vmul.f32 %v238_v2, %v236_v3 }
  0x15   : > { %240 = vst [vmem:[%s233_s27] sm:$0xff] %v239_v4 }
  0x16 PF: > { %s14_s16 = sadd.s32 1, %s398_s16   ;;  %s451_s14 = smov %s394_s15 }
  0x17   : > { %p11_p5 = scmp.ge.s32.totalorder %s14_s16, 4   ;;  %s452_s15 = smov %s454_s17 }
  0x19   :  { %13 = sbr.rel (!%p11_p5) target bundleno = 2 (0x2), region = 65 }

</bundles_post_ra>
